<compile_context>
chip_gen: v5e
topology: v5e:2x2
jax: 0.10.0
libtpu: 0.0.40
codegen_flags: <defaults>
</compile_context>

<pallas_src>
import functools

import jax
import jax.numpy as jnp
from jax.experimental import pallas as pl
from jax.experimental.pallas import tpu as pltpu

EPS = 1e-6
LANES = 128


# ---------------------------------------------------------------------------
# Kernels
# ---------------------------------------------------------------------------
def _norm_kernel(x_ref, alpha_ref, bias_ref, o_ref):
    """Unpacked path (D >= 128 or packing not applicable): one logical row per block row."""
    x = x_ref[...].astype(jnp.float32)                     # (tm, D)
    d = x.shape[-1]
    mean = jnp.mean(x, axis=-1, keepdims=True)             # (tm, 1)
    xc = x - mean
    # torch.std default is unbiased (Bessel's correction, divide by N-1).
    var = jnp.sum(xc * xc, axis=-1, keepdims=True) * (1.0 / max(d - 1, 1))
    inv = pl.reciprocal(jnp.sqrt(var) + EPS)               # (tm, 1), exact, per-row EUP
    alpha = alpha_ref[...].astype(jnp.float32)              # (1, D)
    bias = bias_ref[...].astype(jnp.float32)                # (1, D)
    o_ref[...] = (alpha * (xc * inv) + bias).astype(o_ref.dtype)


def _norm_packed_kernel(x_ref, alpha_ref, bias_ref, seg_ref, segT_ref, o_ref, *, d):
    """Packed path (D < 128, 128 % D == 0): each block row holds k = 128 // d logical
    rows side by side along the 128-lane axis.  Segmented per-row stats via tiny MXU
    matmuls against the 0/1 segment matrix S (reduce) and S^T (broadcast back)."""
    x = x_ref[...].astype(jnp.float32)                      # (tm, 128)
    seg = seg_ref[...]                                      # (128, kp), 0/1 f32
    segT = segT_ref[...]                                    # (kp, 128)
    # Per-segment mean, broadcast back to lanes (f32 MXU accumulation).
    mean = jnp.dot(x, seg, preferred_element_type=jnp.float32) * (1.0 / d)      # (tm, kp)
    xc = x - jnp.dot(mean, segT, preferred_element_type=jnp.float32)            # (tm, 128)
    # Unbiased variance per segment (N-1), then per-row 1/(std+eps) on the EUP.
    var = jnp.dot(xc * xc, seg, preferred_element_type=jnp.float32) * (
        1.0 / max(d - 1, 1))                                                    # (tm, kp)
    inv = pl.reciprocal(jnp.sqrt(var) + EPS)                # (tm, kp), exact, tiny EUP
    inv_b = jnp.dot(inv, segT, preferred_element_type=jnp.float32)              # (tm, 128)
    alpha = alpha_ref[...].astype(jnp.float32)               # (1, 128), pre-tiled
    bias = bias_ref[...].astype(jnp.float32)                 # (1, 128), pre-tiled
    o_ref[...] = (alpha * (xc * inv_b) + bias).astype(o_ref.dtype)


# ---------------------------------------------------------------------------
# Tiling / VMEM budgeting
# ---------------------------------------------------------------------------
def _vmem_budget():
    """(vmem_limit_bytes, per-block f32 byte budget), generation-aware."""
    phys = None
    try:
        phys = getattr(pltpu.get_tpu_info(), "vmem_capacity_bytes", None)
    except Exception:
        phys = None
    if phys is not None and phys >= 100 * 1024 * 1024:
        # v5e / v6e: 128 MiB physical VMEM -> big blocks, 64 MiB scoped limit.
        return 64 * 1024 * 1024, 8 * 1024 * 1024
    # v7x (64 MiB physical) or unknown: leave headroom for f32 intermediates,
    # but keep blocks >= ~4 MiB so per-step overhead stays amortized.
    return 48 * 1024 * 1024, 4 * 1024 * 1024


def _choose_row_tile(rows, width, itemsize, target_bytes):
    """Largest layout-friendly row tile whose f32 working set ~= target_bytes."""
    sub = max(8, 32 // max(1, itemsize))          # sublane multiple: 8 f32, 16 bf16
    rt = int(target_bytes // max(1, width * 4))   # budget in f32 elements (intermediates)
    rt = max(sub, rt - rt % sub)
    # Whole row axis in one block when it fits (block == full array dim is always legal).
    return rows if rt >= rows else rt


# ---------------------------------------------------------------------------
# Wrapper
# ---------------------------------------------------------------------------
def norm_pallas(x, alpha, bias, *, row_tile=None):
    """x: (..., D); alpha, bias: (D,). Returns same shape/dtype as x."""
    orig_shape = x.shape
    d = orig_shape[-1]
    x2 = x.reshape(-1, d)
    rows = x2.shape[0]
    itemsize = x2.dtype.itemsize
    vmem_limit, target_bytes = _vmem_budget()

    k = LANES // d if d > 0 else 0
    pack = (0 < d < LANES) and (LANES % d == 0) and (rows > 0) and (rows % k == 0)

    if pack:
        width = k * d                               # == 128 lanes
        prow = rows // k
        xw = x2.reshape(prow, width)                # free reshape (contiguous)
        alpha_w = jnp.tile(alpha.reshape(1, d), (1, k))
        bias_w = jnp.tile(bias.reshape(1, d), (1, k))
        # Segment-indicator matrix S[l, j] = 1 iff lane l belongs to logical row j.
        kp = ((k + 7) // 8) * 8                     # pad segment axis to sublane multiple
        lane_seg = jax.lax.broadcasted_iota(jnp.int32, (width, kp), 0) // d
        col_id = jax.lax.broadcasted_iota(jnp.int32, (width, kp), 1)
        seg = (lane_seg == col_id).astype(jnp.float32)   # (width, kp); cols >= k are zero
        segT = seg.T                                     # (kp, width)

        rt = row_tile if row_tile is not None else _choose_row_tile(
            prow, width, itemsize, target_bytes)
        grid = pl.cdiv(prow, rt)

        out = pl.pallas_call(
            functools.partial(_norm_packed_kernel, d=d),
            out_shape=jax.ShapeDtypeStruct((prow, width), x.dtype),
            grid_spec=pltpu.PrefetchScalarGridSpec(
                num_scalar_prefetch=0,
                grid=(grid,),
                in_specs=[
                    pl.BlockSpec((rt, width), lambda i: (i, 0)),
                    pl.BlockSpec((1, width), lambda i: (0, 0)),
                    pl.BlockSpec((1, width), lambda i: (0, 0)),
                    pl.BlockSpec((width, kp), lambda i: (0, 0)),
                    pl.BlockSpec((kp, width), lambda i: (0, 0)),
                ],
                out_specs=pl.BlockSpec((rt, width), lambda i: (i, 0)),
            ),
            compiler_params=pltpu.CompilerParams(
                dimension_semantics=("parallel",),
                vmem_limit_bytes=vmem_limit,
            ),
        )(xw, alpha_w, bias_w, seg, segT)
        return out.reshape(orig_shape)

    # Fallback: D >= 128, or D doesn't divide 128, or rows not a multiple of k.
    rt = row_tile if row_tile is not None else _choose_row_tile(
        rows, d, itemsize, target_bytes)
    grid = pl.cdiv(rows, rt)

    out = pl.pallas_call(
        _norm_kernel,
        out_shape=jax.ShapeDtypeStruct((rows, d), x.dtype),
        grid_spec=pltpu.PrefetchScalarGridSpec(
            num_scalar_prefetch=0,
            grid=(grid,),
            in_specs=[
                pl.BlockSpec((rt, d), lambda i: (i, 0)),
                pl.BlockSpec((1, d), lambda i: (0, 0)),
                pl.BlockSpec((1, d), lambda i: (0, 0)),
            ],
            out_specs=pl.BlockSpec((rt, d), lambda i: (i, 0)),
        ),
        compiler_params=pltpu.CompilerParams(
            dimension_semantics=("parallel",),
            vmem_limit_bytes=vmem_limit,
        ),
    )(x2, alpha.reshape(1, d), bias.reshape(1, d))
    return out.reshape(orig_shape)


# ---------------------------------------------------------------------------
# Reference + demo
# ---------------------------------------------------------------------------
def norm_ref(x, alpha, bias):
    x = x.astype(jnp.float32)
    mean = jnp.mean(x, axis=-1, keepdims=True)
    xc = x - mean
    var = jnp.sum(xc * xc, axis=-1, keepdims=True) / max(x.shape[-1] - 1, 1)
    std = jnp.sqrt(var)
    return alpha * xc / (std + EPS) + bias


if __name__ == "__main__":
    key = jax.random.PRNGKey(0)

    # Demo shape implied by the module: (batch=2, seq=8, d_model=32) -> packed path.
    B, S, D = 2, 8, 32
    x = jax.random.normal(key, (B, S, D), dtype=jnp.float32)
    alpha = jnp.ones((D,), dtype=jnp.float32)   # nn.Parameter(torch.ones(d_model))
    bias = jnp.zeros((D,), dtype=jnp.float32)   # nn.Parameter(torch.zeros(d_model))

    out = jax.block_until_ready(norm_pallas(x, alpha, bias))
    ref = norm_ref(x, alpha, bias)
    assert out.shape == x.shape and out.dtype == x.dtype
    assert jnp.max(jnp.abs(out - ref)) < 1e-4

    # Also exercise the unpacked (D >= 128) path once.
    D2 = 128
    x2 = jax.random.normal(jax.random.PRNGKey(1), (2, 8, D2), dtype=jnp.float32)
    a2 = jnp.ones((D2,), dtype=jnp.float32)
    b2 = jnp.zeros((D2,), dtype=jnp.float32)
    out2 = jax.block_until_ready(norm_pallas(x2, a2, b2))
    assert jnp.max(jnp.abs(out2 - norm_ref(x2, a2, b2))) < 1e-4

    print("KERNEL_OK")
</pallas_src>

<mosaic_0001>
module attributes {stable_mosaic.version = 11 : i64} {
  func.func @_norm_packed_kernel(%arg0: i32, %arg1: memref<4x128xf32, #tpu.memory_space<vmem>>, %arg2: memref<1x128xf32, #tpu.memory_space<vmem>>, %arg3: memref<1x128xf32, #tpu.memory_space<vmem>>, %arg4: memref<128x8xf32, #tpu.memory_space<vmem>>, %arg5: memref<8x128xf32, #tpu.memory_space<vmem>>, %arg6: memref<4x128xf32, #tpu.memory_space<vmem>>) attributes {dimension_semantics = [#tpu.dimension_semantics<parallel>], iteration_bounds = array<i64: 1>, scalar_prefetch = 0 : i64, scratch_operands = 0 : i64, tpu.core_type = #tpu.core_type<tc>, window_params = [{transform_indices = @transform_0, window_bounds = array<i64: 4, 128>}, {pipeline_mode = #tpu.pipeline_mode<synchronous>, transform_indices = @transform_1, window_bounds = array<i64: 1, 128>}, {pipeline_mode = #tpu.pipeline_mode<synchronous>, transform_indices = @transform_2, window_bounds = array<i64: 1, 128>}, {pipeline_mode = #tpu.pipeline_mode<synchronous>, transform_indices = @transform_3, window_bounds = array<i64: 128, 8>}, {pipeline_mode = #tpu.pipeline_mode<synchronous>, transform_indices = @transform_4, window_bounds = array<i64: 8, 128>}, {transform_indices = @transform_5, window_bounds = array<i64: 4, 128>}]} {
    %c0 = arith.constant 0 : index
    %c0_0 = arith.constant 0 : index
    %0 = vector.load %arg1[%c0, %c0_0] : memref<4x128xf32, #tpu.memory_space<vmem>>, vector<4x128xf32>
    %c0_1 = arith.constant 0 : index
    %c0_2 = arith.constant 0 : index
    %1 = vector.load %arg4[%c0_1, %c0_2] : memref<128x8xf32, #tpu.memory_space<vmem>>, vector<128x8xf32>
    %c0_3 = arith.constant 0 : index
    %c0_4 = arith.constant 0 : index
    %2 = vector.load %arg5[%c0_3, %c0_4] : memref<8x128xf32, #tpu.memory_space<vmem>>, vector<8x128xf32>
    %cst = arith.constant dense<0.000000e+00> : vector<4x8xf32>
    %3 = tpu.matmul %0, %1, %cst {dimension_numbers = #tpu.dot_dimension_numbers<[1], [0], [0], [1], [0, 0, 1, 1], [], []>} : vector<4x128xf32>, vector<128x8xf32>, vector<4x8xf32> -> vector<4x8xf32>
    %cst_5 = arith.constant 3.125000e-02 : f32
    %4 = vector.broadcast %cst_5 : f32 to vector<4x8xf32>
    %5 = arith.mulf %3, %4 : vector<4x8xf32>
    %cst_6 = arith.constant dense<0.000000e+00> : vector<4x128xf32>
    %6 = tpu.matmul %5, %2, %cst_6 {dimension_numbers = #tpu.dot_dimension_numbers<[1], [0], [0], [1], [0, 0, 1, 1], [], []>} : vector<4x8xf32>, vector<8x128xf32>, vector<4x128xf32> -> vector<4x128xf32>
    %7 = arith.subf %0, %6 : vector<4x128xf32>
    %8 = arith.mulf %7, %7 : vector<4x128xf32>
    %cst_7 = arith.constant dense<0.000000e+00> : vector<4x8xf32>
    %9 = tpu.matmul %8, %1, %cst_7 {dimension_numbers = #tpu.dot_dimension_numbers<[1], [0], [0], [1], [0, 0, 1, 1], [], []>} : vector<4x128xf32>, vector<128x8xf32>, vector<4x8xf32> -> vector<4x8xf32>
    %cst_8 = arith.constant 0.0322580636 : f32
    %10 = vector.broadcast %cst_8 : f32 to vector<4x8xf32>
    %11 = arith.mulf %9, %10 : vector<4x8xf32>
    %12 = math.sqrt %11 : vector<4x8xf32>
    %cst_9 = arith.constant 9.99999997E-7 : f32
    %13 = vector.broadcast %cst_9 : f32 to vector<4x8xf32>
    %14 = arith.addf %12, %13 : vector<4x8xf32>
    %15 = tpu.reciprocal %14 : vector<4x8xf32> -> vector<4x8xf32>
    %cst_10 = arith.constant dense<0.000000e+00> : vector<4x128xf32>
    %16 = tpu.matmul %15, %2, %cst_10 {dimension_numbers = #tpu.dot_dimension_numbers<[1], [0], [0], [1], [0, 0, 1, 1], [], []>} : vector<4x8xf32>, vector<8x128xf32>, vector<4x128xf32> -> vector<4x128xf32>
    %c0_11 = arith.constant 0 : index
    %c0_12 = arith.constant 0 : index
    %17 = vector.load %arg2[%c0_11, %c0_12] : memref<1x128xf32, #tpu.memory_space<vmem>>, vector<1x128xf32>
    %c0_13 = arith.constant 0 : index
    %c0_14 = arith.constant 0 : index
    %18 = vector.load %arg3[%c0_13, %c0_14] : memref<1x128xf32, #tpu.memory_space<vmem>>, vector<1x128xf32>
    %19 = arith.mulf %7, %16 : vector<4x128xf32>
    %20 = vector.broadcast %17 : vector<1x128xf32> to vector<4x128xf32>
    %21 = arith.mulf %20, %19 : vector<4x128xf32>
    %22 = vector.broadcast %18 : vector<1x128xf32> to vector<4x128xf32>
    %23 = arith.addf %21, %22 : vector<4x128xf32>
    %c0_15 = arith.constant 0 : index
    %c0_16 = arith.constant 0 : index
    %24 = vector.load %arg6[%c0_15, %c0_16] : memref<4x128xf32, #tpu.memory_space<vmem>>, vector<4x128xf32>
    tpu.vector_store %arg6[%c0_15, %c0_16], %23 {strides = array<i32>} : memref<4x128xf32, #tpu.memory_space<vmem>>, vector<4x128xf32>,
    return
  }
  func.func @transform_0(%arg0: i32) -> (i32, i32) {
    %c0_i32 = arith.constant 0 : i32
    %c0_i32_0 = arith.constant 0 : i32
    return %arg0, %c0_i32 : i32, i32
  }
  func.func @transform_1(%arg0: i32) -> (i32, i32) {
    %c0_i32 = arith.constant 0 : i32
    %c0_i32_0 = arith.constant 0 : i32
    %c0_i32_1 = arith.constant 0 : i32
    return %c0_i32, %c0_i32_0 : i32, i32
  }
  func.func @transform_2(%arg0: i32) -> (i32, i32) {
    %c0_i32 = arith.constant 0 : i32
    %c0_i32_0 = arith.constant 0 : i32
    %c0_i32_1 = arith.constant 0 : i32
    return %c0_i32, %c0_i32_0 : i32, i32
  }
  func.func @transform_3(%arg0: i32) -> (i32, i32) {
    %c0_i32 = arith.constant 0 : i32
    %c0_i32_0 = arith.constant 0 : i32
    %c0_i32_1 = arith.constant 0 : i32
    return %c0_i32, %c0_i32_0 : i32, i32
  }
  func.func @transform_4(%arg0: i32) -> (i32, i32) {
    %c0_i32 = arith.constant 0 : i32
    %c0_i32_0 = arith.constant 0 : i32
    %c0_i32_1 = arith.constant 0 : i32
    return %c0_i32, %c0_i32_0 : i32, i32
  }
  func.func @transform_5(%arg0: i32) -> (i32, i32) {
    %c0_i32 = arith.constant 0 : i32
    %c0_i32_0 = arith.constant 0 : i32
    return %arg0, %c0_i32 : i32, i32
  }
}

</mosaic_0001>

<bundles_post_ra>
// kernel: tpu_custom_call.1
= control target key start
LH: loop header
LB: loop body
LE: loop exit
PB: predicated region body
PF: predicated region fallthrough
CT: control target
= control target key end

     0   :  { %s316_s0 = inlined_call_operand.vmem [shape: f32[4,128], index: 0, kind: input, shape index: {}]   ;;  %s317_s1 = inlined_call_operand.vmem [shape: f32[1,128], index: 1, kind: input, shape index: {}]   ;;  %s318_s2 = inlined_call_operand.vmem [shape: f32[1,128], index: 2, kind: input, shape index: {}]   ;;  %s319_s3 = inlined_call_operand.vmem [shape: f32[128,8], index: 3, kind: input, shape index: {}]   ;;  %s320_s4 = inlined_call_operand.vmem [shape: f32[8,128], index: 4, kind: input, shape index: {}]   ;;  %s321_s5 = inlined_call_operand.hbm [shape: f32[4,128], index: 5, kind: output, shape index: {}]  }
   0x1   :  { %v37_v0 = vld [vmem:[%s319_s3 + $0x78] sm:$0xff]  ;;  %v36_v1 = vld [vmem:[%s319_s3 + $0x70] sm:$0xff]  ;;  %v35_v2 = vld [vmem:[%s319_s3 + $0x68] sm:$0xff] }
   0x2   :  { %39 = vmatpush.msra.mxu0 %v37_v0  ;;  %86 = vmatpush.msra.mxu2 %v37_v0  ;;  %v34_v3 = vld [vmem:[%s319_s3 + $0x60] sm:$0xff]  ;;  %v33_v4 = vld [vmem:[%s319_s3 + $0x58] sm:$0xff] }
   0x4   :  { %40 = vmatpush.msra.mxu0 %v36_v1  ;;  %87 = vmatpush.msra.mxu2 %v36_v1 }
   0x6   :  { %41 = vmatpush.msra.mxu0 %v35_v2  ;;  %88 = vmatpush.msra.mxu2 %v35_v2 }
   0x7   :  { %10 = vsyncpa [#allocation3], 0  ;;  %v32_v5 = vld [vmem:[%s319_s3 + $0x50] sm:$0xff]  ;;  %v31_v6 = vld [vmem:[%s319_s3 + $0x48] sm:$0xff]  ;;  %vm60_vm0 = vcmask 64512   ;;  %s220_s30 = smov [#allocation2]  }
   0x8   :  { %42 = vmatpush.msra.mxu0 %v34_v3  ;;  %89 = vmatpush.msra.mxu2 %v34_v3  ;;  %v30_v7 = vld [vmem:[%s319_s3 + $0x40] sm:$0xff]  ;;  %v29_v8 = vld [vmem:[%s319_s3 + $0x38] sm:$0xff]  ;;  %v28_v9 = vld [vmem:[%s319_s3 + $0x30] sm:$0xff]  ;;  %s174_s6 = sshll.u32 %s220_s30, 4  ;;  %s176_s9 = sshll.u32 %s321_s5, 4  ;;  %s175_s6 = int_to_ptr.vmem [resolvable:$true] %s174_s6  ;;  %s177_s9 = int_to_ptr.hbm [resolvable:$true] %s176_s9 }
   0x9   :  { %v27_v10 = vld [vmem:[%s319_s3 + $0x28] sm:$0xff]  ;;  %v26_v11 = vld [vmem:[%s319_s3 + $0x20] sm:$0xff]  ;;  %v25_v12 = vld [vmem:[%s319_s3 + $0x18] sm:$0xff] }
   0xa   :  { %43 = vmatpush.msra.mxu0 %v33_v4  ;;  %90 = vmatpush.msra.mxu2 %v33_v4  ;;  %v24_v13 = vld [vmem:[%s319_s3 + $0x10] sm:$0xff]  ;;  %v23_v14 = vld [vmem:[%s319_s3 + $0x8] sm:$0xff]  ;;  %v22_v15 = vld [vmem:[%s319_s3] sm:$0xff] }
   0xb   :  { %v21_v16 = vld [vmem:[%s316_s0] sm:$0xf] }
   0xc   :  { %44 = vmatpush.msra.mxu0 %v32_v5  ;;  %91 = vmatpush.msra.mxu2 %v32_v5  ;;  %v38_v17 = vld [vmem:[%s320_s4] sm:$0xff] }
   0xd   :  { %79 = vmatpush.msra.mxu1 %v38_v17  ;;  %152 = vmatpush.msra.mxu3 %v38_v17  ;;  %v188_v46 = vld [vmem:[%s317_s1] ss:$0 sm:$0xff] }
   0xe   :  { %45 = vmatpush.msra.mxu0 %v31_v6  ;;  %92 = vmatpush.msra.mxu2 %v31_v6  ;;  %v189_v49 = vld [vmem:[%s318_s2] ss:$0 sm:$0xff] }
  0x10   :  { %46 = vmatpush.msra.mxu0 %v30_v7  ;;  %93 = vmatpush.msra.mxu2 %v30_v7 }
  0x12   :  { %47 = vmatpush.msra.mxu0 %v29_v8  ;;  %94 = vmatpush.msra.mxu2 %v29_v8 }
  0x14   :  { %48 = vmatpush.msra.mxu0 %v28_v9  ;;  %95 = vmatpush.msra.mxu2 %v28_v9 }
  0x16   :  { %49 = vmatpush.msra.mxu0 %v27_v10  ;;  %96 = vmatpush.msra.mxu2 %v27_v10 }
  0x18   :  { %50 = vmatpush.msra.mxu0 %v26_v11  ;;  %97 = vmatpush.msra.mxu2 %v26_v11 }
  0x1a   :  { %51 = vmatpush.msra.mxu0 %v25_v12  ;;  %98 = vmatpush.msra.mxu2 %v25_v12 }
  0x1c   :  { %52 = vmatpush.msra.mxu0 %v24_v13  ;;  %99 = vmatpush.msra.mxu2 %v24_v13 }
  0x1e   :  { %53 = vmatpush.msra.mxu0 %v23_v14  ;;  %100 = vmatpush.msra.mxu2 %v23_v14 }
  0x20   :  { %54 = vmatpush.msra.mxu0 %v22_v15  ;;  %101 = vmatpush.msra.mxu2 %v22_v15 }
  0x21   :  { %55 = vmatmul.f32.vlgmr.msra.gmra.mxu0 %v21_v16 }
  0x9e   :  { %v56_v18 = vpop.f32.mrf.mxu0 }
  0x9f   :  { %v59_v19 = vmul.f32 0.03125, %v56_v18 }
  0xa1   :  { %185 = vmatmul.msk.f32.vlgmr.msra.gmra.mxu1 %vm60_vm0, %v59_v19 }
 0x11e   :  { %v81_v20 = vpop.f32.mrf.mxu1 }
 0x11f   :  { %v84_v21 = vsub.f32 %v21_v16, %v81_v20 }
 0x121   :  { %v85_v22 = vmul.f32 %v84_v21, %v84_v21 }
 0x123   :  { %102 = vmatmul.f32.vlgmr.msra.gmra.mxu2 %v85_v22 }
 0x1a6   :  { %v103_v23 = vpop.f32.mrf.mxu2 }
 0x1a7   :  { %v106_v24 = vmul.f32 0.032258064, %v103_v23 }
 0x1a9   :  { %190 = vrsqrt.f32 %v106_v24  ;;  %vm114_vm1 = vcmp.eq.f32.partialorder %v106_v24, inf  ;;  %v117_v32 = vand.u32 2147483648, %v106_v24  ;;  %vm116_vm2 = vcmp.eq.f32.partialorder %v106_v24, 0.0 }
 0x1af   :  { %v191_v25 = vpop.eup %190 }
 0x1b0   :  { %v108_v26 = vmul.f32 %v191_v25, %v106_v24 }
 0x1b2   :  { %v109_v27 = vmul.f32 %v191_v25, %v108_v26 }
 0x1b4   :  { %v110_v28 = vmul.f32 0.5, %v109_v27 }
 0x1b6   :  { %v111_v29 = vsub.f32 1.5, %v110_v28 }
 0x1b8   :  { %v112_v30 = vmul.f32 %v191_v25, %v111_v29 }
 0x1ba   :  { %v113_v31 = vmul.f32 %v112_v30, %v106_v24 }
 0x1bc   :  { %v115_v33 = vsel %vm114_vm1, %v106_v24, %v113_v31 }
 0x1bd   :  { %v118_v34 = vsel %vm116_vm2, %v117_v32, %v115_v33 }
 0x1be   :  { %v119_v35 = vadd.f32 1e-06, %v118_v34 }
 0x1c0   :  { %192 = vrcp.f32 %v119_v35  ;;  %v131_v39 = vand.u32 2147483648, %v119_v35  ;;  %v129_v41 = vand.u32 2147483647, %v119_v35  ;;  %vm125_vm4 = vweird.f32 %v119_v35 }
 0x1c2   :  { %v132_v43 = vor.u32 1.1754944e-38, %v131_v39  ;;  %vm130_vm6 = vcmp.eq.f32.partialorder %v129_v41, 8.507059e+37 }
 0x1c6   :  { %v193_v36 = vpop.eup %192 }
 0x1c7   :  { %v121_v37 = vmul.f32 %v193_v36, %v119_v35  ;;  %vm126_vm3 = vweird.f32 %v193_v36 }
 0x1c8   :  { %vm127_vm5 = vmor %vm125_vm4, %vm126_vm3 }
 0x1c9   :  { %v122_v38 = vsub.f32 1.0, %v121_v37 }
 0x1cb   :  { %v123_v40 = vmul.f32 %v193_v36, %v122_v38 }
 0x1cd   :  { %v124_v42 = vadd.f32 %v193_v36, %v123_v40 }
 0x1cf   :  { %v128_v44 = vsel %vm127_vm5, %v193_v36, %v124_v42 }
 0x1d0   :  { %v133_v45 = vsel %vm130_vm6, %v132_v43, %v128_v44 }
 0x1d1   :  { %186 = vmatmul.msk.f32.vlgmr.msra.gmra.mxu3 %vm60_vm0, %v133_v45 }
 0x254   :  { %v154_v47 = vpop.f32.mrf.mxu3 }
 0x255   :  { %v159_v48 = vmul.f32 %v154_v47, %v84_v21 }
 0x257   :  { %v163_v50 = vmul.f32 %v188_v46, %v159_v48 }
 0x259   :  { %v167_v51 = vadd.f32 %v189_v49, %v163_v50 }
 0x25b   :  { %168 = vst [vmem:[#allocation2] sm:$0xf] %v167_v51 }
 0x25c   :  { %179 = dma.vmem_to_hbm [thread:$0]  %s175_s6, 64, %s177_s9, [#allocation3]  }
 0x25d   :  { %218 = dma.done.wait [#allocation3], 64  }
 0x25e   :  { %219 = vsyncadd [#allocation3], 4294967232 }
 0x25f   :  { %184 = vsyncpa [#allocation3], 1 }

</bundles_post_ra>
